<compile_context>
chip_gen: v7x
topology: tpu7x:2x2x1
jax: 0.10.0
libtpu: 0.0.40
codegen_flags: <defaults>
</compile_context>

<pallas_src>
import jax
import jax.numpy as jnp
from jax.experimental import pallas as pl
from jax.experimental.pallas import tpu as pltpu


def _round_up(x, m):
    return (x + m - 1) // m * m


# ----------------------------------------------------------------------------
# Kernel: full VAE forward for one batch tile, entirely in VMEM.
# ----------------------------------------------------------------------------
def _vae_kernel(x_ref, eps_ref,
                w1_ref, b1_ref,
                wml_ref, bml_ref,
                w3_ref, b3_ref,
                w4_ref, b4_ref,
                recon_ref, mlv_ref):
    f32 = jnp.float32
    L = eps_ref.shape[-1]

    # ---- encoder ----
    h1 = jnp.dot(x_ref[...].astype(w1_ref.dtype), w1_ref[...],
                 preferred_element_type=f32)
    h1 = jnp.maximum(h1 + b1_ref[...], 0.0)           # ReLU in f32 (v5e-safe)

    # fused mu||logvar: one (H, 2L) weight, one dot, one bias add
    mlv = jnp.dot(h1.astype(wml_ref.dtype), wml_ref[...],
                  preferred_element_type=f32) + bml_ref[...]
    mu = mlv[:, :L]
    logvar = mlv[:, L:]

    # ---- reparameterize: z = mu + eps * exp(0.5 * logvar) ----
    z = mu + eps_ref[...] * jnp.exp(0.5 * logvar)      # exp on EUP, f32

    # ---- decoder ----
    h3 = jnp.dot(z.astype(w3_ref.dtype), w3_ref[...],
                 preferred_element_type=f32)
    h3 = jnp.maximum(h3 + b3_ref[...], 0.0)
    logits = jnp.dot(h3.astype(w4_ref.dtype), w4_ref[...],
                     preferred_element_type=f32) + b4_ref[...]
    # Sigmoid only over the true 180 lanes (no padded lanes), f32 EUP, then
    # a single cast-store to the (possibly bf16) recon output.
    recon_ref[...] = jax.nn.sigmoid(logits).astype(recon_ref.dtype)
    mlv_ref[...] = mlv.astype(mlv_ref.dtype)


# ----------------------------------------------------------------------------
# Tile / VMEM sizing helpers.
# ----------------------------------------------------------------------------
_VMEM_TILE_BUDGET = 32 << 20     # conservative: fits v7x's 64 MiB/TC comfortably
_MIN_GRID_STEPS = 4              # keep both v7x TensorCores busy + pipelined


def _vmem_block_bytes(rows, cols, dtype):
    dt = jnp.dtype(dtype)
    sub = 8 * max(1, 4 // dt.itemsize)       # f32: 8, bf16: 16 sublane tiling
    return _round_up(rows, sub) * _round_up(cols, 128) * dt.itemsize


def _vmem_estimate(tile, F_in, H, L, x_dtype, recon_dtype, weight_dtype):
    f32 = jnp.float32
    b = 0
    # double-buffered batch-tiled streams
    b += 2 * _vmem_block_bytes(tile, F_in, x_dtype)        # x
    b += 2 * _vmem_block_bytes(tile, L, f32)               # eps
    b += 2 * _vmem_block_bytes(tile, F_in, recon_dtype)    # recon
    b += 2 * _vmem_block_bytes(tile, 2 * L, f32)           # mu||logvar
    # grid-invariant weights / biases (count double-buffered, worst case)
    b += 2 * (_vmem_block_bytes(F_in, H, weight_dtype)
              + _vmem_block_bytes(H, F_in, weight_dtype)
              + _vmem_block_bytes(H, 2 * L, f32)
              + _vmem_block_bytes(L, H, f32))
    b += 2 * 4 * _vmem_block_bytes(1, max(F_in, H), f32)
    # f32 intermediates (h1 / logits / sigmoid temporaries)
    b += 4 * _vmem_block_bytes(tile, F_in, f32)
    return b


def _choose_batch_tile(B, desired):
    """16-aligned batch tile; whole batch if tiny; >=_MIN_GRID_STEPS steps if big."""
    Bp = _round_up(B, 8)
    if Bp <= 16:
        return Bp                      # single block == full (padded) batch
    tile = min(_round_up(int(desired), 16), _round_up(Bp, 16))
    if Bp > _MIN_GRID_STEPS * 16:
        tile = min(tile, _round_up(pl.cdiv(Bp, _MIN_GRID_STEPS), 16))
    return max(tile, 16)


# ----------------------------------------------------------------------------
# Wrapper.
# ----------------------------------------------------------------------------
def vae_forward(x, eps, params, *, batch_tile=4096,
                recon_dtype=jnp.bfloat16, weight_dtype=jnp.bfloat16):
    """VAE forward pass with a fused Pallas TPU kernel.

    x:      (B, F_in) input (used at its native dtype; pass bf16 to halve reads)
    eps:    (B, L) standard-normal noise (reparameterization trick)
    params: dict of w1,b1, w21,b21, w22,b22, w3,b3, w4,b4; weights (in, out),
            biases (1, out).
    Returns (recon (B, F_in) recon_dtype, mu (B, L) f32, logvar (B, L) f32).
    """
    f32 = jnp.float32
    B, F_in = x.shape
    H = params["w1"].shape[1]          # hidden width (32)
    L = params["w21"].shape[1]         # latent width (8)
    assert params["w4"].shape == (H, F_in)
    assert eps.shape == (B, L)
    recon_dt = jnp.dtype(recon_dtype)
    weight_dt = jnp.dtype(weight_dtype)

    # --- batch tiling (feature axes are NOT padded: blocks use the true widths)
    tile = _choose_batch_tile(B, batch_tile)
    while tile > 16 and _vmem_estimate(tile, F_in, H, L, x.dtype,
                                       recon_dt, weight_dt) > _VMEM_TILE_BUDGET:
        tile = max(16, _round_up(tile // 2, 16))
    B_pad = _round_up(B, tile)
    grid = (B_pad // tile,)

    # Batch-only zero padding, and only when actually needed (zeros are benign:
    # exp(0.5*b22) and sigmoid(b4) on pad rows are finite and sliced off).
    if B_pad != B:
        xk = jnp.zeros((B_pad, F_in), x.dtype).at[:B].set(x)
        epsk = jnp.zeros((B_pad, L), f32).at[:B].set(eps.astype(f32))
    else:
        xk = x
        epsk = eps.astype(f32)

    # Weights: big ones in weight_dtype (bf16 default, MXU inputs only);
    # tiny mu/logvar/z weights stay f32 (negligible bytes, better precision).
    w1 = params["w1"].astype(weight_dt)
    w4 = params["w4"].astype(weight_dt)
    wml = jnp.concatenate([params["w21"], params["w22"]], axis=1).astype(f32)
    w3 = params["w3"].astype(f32)
    b1 = params["b1"].astype(f32)
    bml = jnp.concatenate([params["b21"], params["b22"]], axis=1).astype(f32)
    b3 = params["b3"].astype(f32)
    b4 = params["b4"].astype(f32)

    def full2d(a):
        return pl.BlockSpec(a.shape, lambda i: (0, 0))

    bytes_accessed = int(
        xk.size * xk.dtype.itemsize
        + epsk.size * 4
        + w1.size * w1.dtype.itemsize + w4.size * w4.dtype.itemsize
        + (wml.size + w3.size) * 4
        + (b1.size + bml.size + b3.size + b4.size) * 4
        + B_pad * F_in * recon_dt.itemsize          # recon writeback
        + B_pad * 2 * L * 4)                        # mu||logvar writeback
    cost = pl.CostEstimate(
        flops=int(2 * B_pad * (F_in * H + H * 2 * L + L * H + H * F_in)),
        transcendentals=int(B_pad * (L + F_in)),
        bytes_accessed=bytes_accessed)

    vmem_limit = int(min(
        _vmem_estimate(tile, F_in, H, L, xk.dtype, recon_dt, weight_dt)
        + (16 << 20),
        56 << 20))

    recon_p, mlv_p = pl.pallas_call(
        _vae_kernel,
        out_shape=(
            jax.ShapeDtypeStruct((B_pad, F_in), recon_dt),
            jax.ShapeDtypeStruct((B_pad, 2 * L), f32),
        ),
        grid_spec=pltpu.PrefetchScalarGridSpec(
            num_scalar_prefetch=0,
            grid=grid,
            in_specs=(
                pl.BlockSpec((tile, F_in), lambda i: (i, 0)),
                pl.BlockSpec((tile, L), lambda i: (i, 0)),
                full2d(w1), full2d(b1),
                full2d(wml), full2d(bml),
                full2d(w3), full2d(b3),
                full2d(w4), full2d(b4),
            ),
            out_specs=(
                pl.BlockSpec((tile, F_in), lambda i: (i, 0)),
                pl.BlockSpec((tile, 2 * L), lambda i: (i, 0)),
            ),
        ),
        compiler_params=pltpu.CompilerParams(
            dimension_semantics=("parallel",),
            vmem_limit_bytes=vmem_limit),
        cost_estimate=cost,
    )(xk, epsk, w1, b1, wml, bml, w3, b3, w4, b4)

    recon = recon_p if B_pad == B else recon_p[:B]
    mu = mlv_p[:B, :L]
    logvar = mlv_p[:B, L:]
    return recon, mu, logvar


# ----------------------------------------------------------------------------
# Parameter init + pure-JAX reference (for correctness checks).
# ----------------------------------------------------------------------------
def init_vae_params(key, sizes=(180, 32, 8)):
    """Deterministic synthetic parameters (PyTorch-like uniform fan-in init)."""
    s0, s1, s2 = sizes
    layer_dims = [("1", (s0, s1)), ("21", (s1, s2)), ("22", (s1, s2)),
                  ("3", (s2, s1)), ("4", (s1, s0))]
    params = {}
    keys = jax.random.split(key, 2 * len(layer_dims))
    for idx, (name, (fan_in, fan_out)) in enumerate(layer_dims):
        bound = 1.0 / jnp.sqrt(float(fan_in))
        params[f"w{name}"] = jax.random.uniform(
            keys[2 * idx], (fan_in, fan_out),
            minval=-bound, maxval=bound, dtype=jnp.float32)
        params[f"b{name}"] = jax.random.uniform(
            keys[2 * idx + 1], (1, fan_out),
            minval=-bound, maxval=bound, dtype=jnp.float32)
    return params


def vae_reference(x, eps, params):
    """Pure-JAX reference of the PyTorch VAE forward (same eps)."""
    h1 = jnp.maximum(x @ params["w1"] + params["b1"], 0.0)
    mu = h1 @ params["w21"] + params["b21"]
    logvar = h1 @ params["w22"] + params["b22"]
    z = mu + eps * jnp.exp(0.5 * logvar)
    h3 = jnp.maximum(z @ params["w3"] + params["b3"], 0.0)
    recon = jax.nn.sigmoid(h3 @ params["w4"] + params["b4"])
    return recon, mu, logvar


if __name__ == "__main__":
    sizes = (180, 32, 8)
    key = jax.random.PRNGKey(0)
    kp, kx, ke, kx2, ke2, kx3, ke3 = jax.random.split(key, 7)
    params = init_vae_params(kp, sizes)

    # Case 1: small single-tile, all-f32 path (tight tolerance, no padding).
    B = 8
    x = jax.random.normal(kx, (B, sizes[0]), dtype=jnp.float32)
    eps = jax.random.normal(ke, (B, sizes[2]), dtype=jnp.float32)
    recon, mu, logvar = jax.block_until_ready(
        vae_forward(x, eps, params,
                    recon_dtype=jnp.float32, weight_dtype=jnp.float32))
    r_ref, m_ref, lv_ref = vae_reference(x, eps, params)
    assert recon.shape == (B, sizes[0]) and recon.dtype == jnp.float32
    assert mu.shape == (B, sizes[2]) and logvar.shape == (B, sizes[2])
    assert jnp.allclose(recon, r_ref, atol=1e-5, rtol=1e-5), "recon mismatch"
    assert jnp.allclose(mu, m_ref, atol=1e-5, rtol=1e-5), "mu mismatch"
    assert jnp.allclose(logvar, lv_ref, atol=1e-5, rtol=1e-5), "logvar mismatch"

    # Case 2: multi-step grid + batch-tail padding, default bf16 recon/weights.
    B2 = 40
    x2 = jax.random.normal(kx2, (B2, sizes[0]), dtype=jnp.float32)
    eps2 = jax.random.normal(ke2, (B2, sizes[2]), dtype=jnp.float32)
    recon2, mu2, logvar2 = jax.block_until_ready(
        vae_forward(x2, eps2, params, batch_tile=16))
    r2, m2, l2 = vae_reference(x2, eps2, params)
    assert recon2.shape == (B2, sizes[0]) and recon2.dtype == jnp.bfloat16
    assert jnp.allclose(recon2.astype(jnp.float32), r2, atol=2e-2, rtol=2e-2), \
        "tiled bf16 recon mismatch"
    assert jnp.allclose(mu2, m2, atol=2e-2, rtol=2e-2), "tiled mu mismatch"
    assert jnp.allclose(logvar2, l2, atol=2e-2, rtol=2e-2), "tiled logvar mismatch"

    # Case 3: larger batch, default tiling (exercises the >=4-step grid cap).
    B3 = 4096
    x3 = jax.random.normal(kx3, (B3, sizes[0]), dtype=jnp.float32)
    eps3 = jax.random.normal(ke3, (B3, sizes[2]), dtype=jnp.float32)
    recon3, mu3, logvar3 = jax.block_until_ready(
        vae_forward(x3, eps3, params))
    r3, m3, l3 = vae_reference(x3, eps3, params)
    assert recon3.shape == (B3, sizes[0])
    assert jnp.allclose(recon3.astype(jnp.float32), r3, atol=2e-2, rtol=2e-2), \
        "large-batch recon mismatch"
    assert jnp.allclose(mu3, m3, atol=2e-2, rtol=2e-2), "large-batch mu mismatch"
    assert jnp.allclose(logvar3, l3, atol=2e-2, rtol=2e-2), \
        "large-batch logvar mismatch"

    print("KERNEL_OK")
</pallas_src>

<mosaic_0001>
module attributes {stable_mosaic.version = 11 : i64} {
  func.func @_vae_kernel(%arg0: i32, %arg1: memref<8x180xf32, #tpu.memory_space<vmem>>, %arg2: memref<8x8xf32, #tpu.memory_space<vmem>>, %arg3: memref<180x32xf32, #tpu.memory_space<vmem>>, %arg4: memref<1x32xf32, #tpu.memory_space<vmem>>, %arg5: memref<32x16xf32, #tpu.memory_space<vmem>>, %arg6: memref<1x16xf32, #tpu.memory_space<vmem>>, %arg7: memref<8x32xf32, #tpu.memory_space<vmem>>, %arg8: memref<1x32xf32, #tpu.memory_space<vmem>>, %arg9: memref<32x180xf32, #tpu.memory_space<vmem>>, %arg10: memref<1x180xf32, #tpu.memory_space<vmem>>, %arg11: memref<8x180xf32, #tpu.memory_space<vmem>>, %arg12: memref<8x16xf32, #tpu.memory_space<vmem>>) attributes {dimension_semantics = [#tpu.dimension_semantics<parallel>], iteration_bounds = array<i64: 1>, scalar_prefetch = 0 : i64, scratch_operands = 0 : i64, tpu.core_type = #tpu.core_type<tc>, window_params = [{transform_indices = @transform_0, window_bounds = array<i64: 8, 180>}, {transform_indices = @transform_1, window_bounds = array<i64: 8, 8>}, {pipeline_mode = #tpu.pipeline_mode<synchronous>, transform_indices = @transform_2, window_bounds = array<i64: 180, 32>}, {pipeline_mode = #tpu.pipeline_mode<synchronous>, transform_indices = @transform_3, window_bounds = array<i64: 1, 32>}, {pipeline_mode = #tpu.pipeline_mode<synchronous>, transform_indices = @transform_4, window_bounds = array<i64: 32, 16>}, {pipeline_mode = #tpu.pipeline_mode<synchronous>, transform_indices = @transform_5, window_bounds = array<i64: 1, 16>}, {pipeline_mode = #tpu.pipeline_mode<synchronous>, transform_indices = @transform_6, window_bounds = array<i64: 8, 32>}, {pipeline_mode = #tpu.pipeline_mode<synchronous>, transform_indices = @transform_7, window_bounds = array<i64: 1, 32>}, {pipeline_mode = #tpu.pipeline_mode<synchronous>, transform_indices = @transform_8, window_bounds = array<i64: 32, 180>}, {pipeline_mode = #tpu.pipeline_mode<synchronous>, transform_indices = @transform_9, window_bounds = array<i64: 1, 180>}, {transform_indices = @transform_10, window_bounds = array<i64: 8, 180>}, {transform_indices = @transform_11, window_bounds = array<i64: 8, 16>}]} {
    %c0 = arith.constant 0 : index
    %c0_0 = arith.constant 0 : index
    %0 = vector.load %arg1[%c0, %c0_0] : memref<8x180xf32, #tpu.memory_space<vmem>>, vector<8x180xf32>
    %c0_1 = arith.constant 0 : index
    %c0_2 = arith.constant 0 : index
    %1 = vector.load %arg3[%c0_1, %c0_2] : memref<180x32xf32, #tpu.memory_space<vmem>>, vector<180x32xf32>
    %cst = arith.constant dense<0.000000e+00> : vector<8x32xf32>
    %2 = tpu.matmul %0, %1, %cst {dimension_numbers = #tpu.dot_dimension_numbers<[1], [0], [0], [1], [0, 0, 1, 1], [], []>} : vector<8x180xf32>, vector<180x32xf32>, vector<8x32xf32> -> vector<8x32xf32>
    %c0_3 = arith.constant 0 : index
    %c0_4 = arith.constant 0 : index
    %3 = vector.load %arg4[%c0_3, %c0_4] : memref<1x32xf32, #tpu.memory_space<vmem>>, vector<1x32xf32>
    %4 = vector.broadcast %3 : vector<1x32xf32> to vector<8x32xf32>
    %5 = arith.addf %2, %4 : vector<8x32xf32>
    %cst_5 = arith.constant 0.000000e+00 : f32
    %6 = vector.broadcast %cst_5 : f32 to vector<8x32xf32>
    %7 = arith.maximumf %5, %6 : vector<8x32xf32>
    %c0_6 = arith.constant 0 : index
    %c0_7 = arith.constant 0 : index
    %8 = vector.load %arg5[%c0_6, %c0_7] : memref<32x16xf32, #tpu.memory_space<vmem>>, vector<32x16xf32>
    %cst_8 = arith.constant dense<0.000000e+00> : vector<8x16xf32>
    %9 = tpu.matmul %7, %8, %cst_8 {dimension_numbers = #tpu.dot_dimension_numbers<[1], [0], [0], [1], [0, 0, 1, 1], [], []>} : vector<8x32xf32>, vector<32x16xf32>, vector<8x16xf32> -> vector<8x16xf32>
    %c0_9 = arith.constant 0 : index
    %c0_10 = arith.constant 0 : index
    %10 = vector.load %arg6[%c0_9, %c0_10] : memref<1x16xf32, #tpu.memory_space<vmem>>, vector<1x16xf32>
    %11 = vector.broadcast %10 : vector<1x16xf32> to vector<8x16xf32>
    %12 = arith.addf %9, %11 : vector<8x16xf32>
    %13 = vector.extract_strided_slice %12 {offsets = [0, 0], sizes = [8, 8], strides = [1, 1]} : vector<8x16xf32> to vector<8x8xf32>
    %14 = vector.extract_strided_slice %12 {offsets = [0, 8], sizes = [8, 8], strides = [1, 1]} : vector<8x16xf32> to vector<8x8xf32>
    %c0_11 = arith.constant 0 : index
    %c0_12 = arith.constant 0 : index
    %15 = vector.load %arg2[%c0_11, %c0_12] : memref<8x8xf32, #tpu.memory_space<vmem>>, vector<8x8xf32>
    %cst_13 = arith.constant 5.000000e-01 : f32
    %16 = vector.broadcast %cst_13 : f32 to vector<8x8xf32>
    %17 = arith.mulf %16, %14 : vector<8x8xf32>
    %18 = math.exp %17 : vector<8x8xf32>
    %19 = arith.mulf %15, %18 : vector<8x8xf32>
    %20 = arith.addf %13, %19 : vector<8x8xf32>
    %c0_14 = arith.constant 0 : index
    %c0_15 = arith.constant 0 : index
    %21 = vector.load %arg7[%c0_14, %c0_15] : memref<8x32xf32, #tpu.memory_space<vmem>>, vector<8x32xf32>
    %cst_16 = arith.constant dense<0.000000e+00> : vector<8x32xf32>
    %22 = tpu.matmul %20, %21, %cst_16 {dimension_numbers = #tpu.dot_dimension_numbers<[1], [0], [0], [1], [0, 0, 1, 1], [], []>} : vector<8x8xf32>, vector<8x32xf32>, vector<8x32xf32> -> vector<8x32xf32>
    %c0_17 = arith.constant 0 : index
    %c0_18 = arith.constant 0 : index
    %23 = vector.load %arg8[%c0_17, %c0_18] : memref<1x32xf32, #tpu.memory_space<vmem>>, vector<1x32xf32>
    %24 = vector.broadcast %23 : vector<1x32xf32> to vector<8x32xf32>
    %25 = arith.addf %22, %24 : vector<8x32xf32>
    %cst_19 = arith.constant 0.000000e+00 : f32
    %26 = vector.broadcast %cst_19 : f32 to vector<8x32xf32>
    %27 = arith.maximumf %25, %26 : vector<8x32xf32>
    %c0_20 = arith.constant 0 : index
    %c0_21 = arith.constant 0 : index
    %28 = vector.load %arg9[%c0_20, %c0_21] : memref<32x180xf32, #tpu.memory_space<vmem>>, vector<32x180xf32>
    %cst_22 = arith.constant dense<0.000000e+00> : vector<8x180xf32>
    %29 = tpu.matmul %27, %28, %cst_22 {dimension_numbers = #tpu.dot_dimension_numbers<[1], [0], [0], [1], [0, 0, 1, 1], [], []>} : vector<8x32xf32>, vector<32x180xf32>, vector<8x180xf32> -> vector<8x180xf32>
    %c0_23 = arith.constant 0 : index
    %c0_24 = arith.constant 0 : index
    %30 = vector.load %arg10[%c0_23, %c0_24] : memref<1x180xf32, #tpu.memory_space<vmem>>, vector<1x180xf32>
    %31 = vector.broadcast %30 : vector<1x180xf32> to vector<8x180xf32>
    %32 = arith.addf %29, %31 : vector<8x180xf32>
    %33 = arith.negf %32 : vector<8x180xf32>
    %34 = math.exp %33 : vector<8x180xf32>
    %cst_25 = arith.constant 1.000000e+00 : f32
    %35 = vector.broadcast %cst_25 : f32 to vector<8x180xf32>
    %36 = arith.addf %35, %34 : vector<8x180xf32>
    %37 = arith.divf %35, %36 : vector<8x180xf32>
    %c0_26 = arith.constant 0 : index
    %c0_27 = arith.constant 0 : index
    %38 = vector.load %arg11[%c0_26, %c0_27] : memref<8x180xf32, #tpu.memory_space<vmem>>, vector<8x180xf32>
    tpu.vector_store %arg11[%c0_26, %c0_27], %37 {strides = array<i32>} : memref<8x180xf32, #tpu.memory_space<vmem>>, vector<8x180xf32>,
    %c0_28 = arith.constant 0 : index
    %c0_29 = arith.constant 0 : index
    %39 = vector.load %arg12[%c0_28, %c0_29] : memref<8x16xf32, #tpu.memory_space<vmem>>, vector<8x16xf32>
    tpu.vector_store %arg12[%c0_28, %c0_29], %12 {strides = array<i32>} : memref<8x16xf32, #tpu.memory_space<vmem>>, vector<8x16xf32>,
    return
  }
  func.func @transform_0(%arg0: i32) -> (i32, i32) {
    %c0_i32 = arith.constant 0 : i32
    %c0_i32_0 = arith.constant 0 : i32
    return %arg0, %c0_i32 : i32, i32
  }
  func.func @transform_1(%arg0: i32) -> (i32, i32) {
    %c0_i32 = arith.constant 0 : i32
    %c0_i32_0 = arith.constant 0 : i32
    return %arg0, %c0_i32 : i32, i32
  }
  func.func @transform_2(%arg0: i32) -> (i32, i32) {
    %c0_i32 = arith.constant 0 : i32
    %c0_i32_0 = arith.constant 0 : i32
    %c0_i32_1 = arith.constant 0 : i32
    return %c0_i32, %c0_i32_0 : i32, i32
  }
  func.func @transform_3(%arg0: i32) -> (i32, i32) {
    %c0_i32 = arith.constant 0 : i32
    %c0_i32_0 = arith.constant 0 : i32
    %c0_i32_1 = arith.constant 0 : i32
    return %c0_i32, %c0_i32_0 : i32, i32
  }
  func.func @transform_4(%arg0: i32) -> (i32, i32) {
    %c0_i32 = arith.constant 0 : i32
    %c0_i32_0 = arith.constant 0 : i32
    %c0_i32_1 = arith.constant 0 : i32
    return %c0_i32, %c0_i32_0 : i32, i32
  }
  func.func @transform_5(%arg0: i32) -> (i32, i32) {
    %c0_i32 = arith.constant 0 : i32
    %c0_i32_0 = arith.constant 0 : i32
    %c0_i32_1 = arith.constant 0 : i32
    return %c0_i32, %c0_i32_0 : i32, i32
  }
  func.func @transform_6(%arg0: i32) -> (i32, i32) {
    %c0_i32 = arith.constant 0 : i32
    %c0_i32_0 = arith.constant 0 : i32
    %c0_i32_1 = arith.constant 0 : i32
    return %c0_i32, %c0_i32_0 : i32, i32
  }
  func.func @transform_7(%arg0: i32) -> (i32, i32) {
    %c0_i32 = arith.constant 0 : i32
    %c0_i32_0 = arith.constant 0 : i32
    %c0_i32_1 = arith.constant 0 : i32
    return %c0_i32, %c0_i32_0 : i32, i32
  }
  func.func @transform_8(%arg0: i32) -> (i32, i32) {
    %c0_i32 = arith.constant 0 : i32
    %c0_i32_0 = arith.constant 0 : i32
    %c0_i32_1 = arith.constant 0 : i32
    return %c0_i32, %c0_i32_0 : i32, i32
  }
  func.func @transform_9(%arg0: i32) -> (i32, i32) {
    %c0_i32 = arith.constant 0 : i32
    %c0_i32_0 = arith.constant 0 : i32
    %c0_i32_1 = arith.constant 0 : i32
    return %c0_i32, %c0_i32_0 : i32, i32
  }
  func.func @transform_10(%arg0: i32) -> (i32, i32) {
    %c0_i32 = arith.constant 0 : i32
    %c0_i32_0 = arith.constant 0 : i32
    return %arg0, %c0_i32 : i32, i32
  }
  func.func @transform_11(%arg0: i32) -> (i32, i32) {
    %c0_i32 = arith.constant 0 : i32
    %c0_i32_0 = arith.constant 0 : i32
    return %arg0, %c0_i32 : i32, i32
  }
}

</mosaic_0001>

<bundles_post_ra>
// kernel: tpu_custom_call.1
= control target key start
LH: loop header
LB: loop body
LE: loop exit
PB: predicated region body
PF: predicated region fallthrough
CT: control target
= control target key end

     0   :  { %17 = vsyncpa [#allocation3], 0  ;;  %v610_v3 = vmov 0.0|0.0   ;;  %vm71_vm0 = vcmask 424960   ;;  %s833_s0 = inlined_call_operand.vmem [shape: f32[8,180], index: 0, kind: input, shape index: {}]   ;;  %s834_s1 = inlined_call_operand.vmem [shape: f32[8,8], index: 1, kind: input, shape index: {}]   ;;  %s835_s2 = inlined_call_operand.vmem [shape: f32[180,32], index: 2, kind: input, shape index: {}]   ;;  %s836_s3 = inlined_call_operand.vmem [shape: f32[1,32], index: 3, kind: input, shape index: {}]   ;;  %s837_s4 = inlined_call_operand.vmem [shape: f32[32,16], index: 4, kind: input, shape index: {}]   ;;  %s838_s5 = inlined_call_operand.vmem [shape: f32[1,16], index: 5, kind: input, shape index: {}]   ;;  %s839_s6 = inlined_call_operand.vmem [shape: f32[8,32], index: 6, kind: input, shape index: {}]   ;;  %s840_s7 = inlined_call_operand.vmem [shape: f32[1,32], index: 7, kind: input, shape index: {}]   ;;  %s841_s8 = inlined_call_operand.vmem [shape: f32[32,180], index: 8, kind: input, shape index: {}]   ;;  %s842_s9 = inlined_call_operand.vmem [shape: f32[1,180], index: 9, kind: input, shape index: {}]   ;;  %s843_s10 = inlined_call_operand.hbm [shape: f32[8,180], index: 10, kind: output, shape index: {0}]   ;;  %s844_s11 = inlined_call_operand.hbm [shape: f32[8,16], index: 11, kind: output, shape index: {1}]  }
   0x1   :  { %v41_v0 = vld [vmem:[%s835_s2] sm:$0xff]  ;;  %v42_v1 = vld [vmem:[%s835_s2 + $0x8] sm:$0xff]  ;;  %v43_v2 = vld [vmem:[%s835_s2 + $0x10] sm:$0xff]  ;;  %499 = vmatprep.subr.bf16.mxu0 %v610_v3  ;;  %532 = vmatprep.subr.bf16.mxu1 %v610_v3 }
   0x2   :  { %v500_v4 = vpack.c.bf16 %v42_v1, %v41_v0  ;;  %v44_v5 = vld [vmem:[%s835_s2 + $0x18] sm:$0xff]  ;;  %v45_v7 = vld [vmem:[%s835_s2 + $0x20] sm:$0xff]  ;;  %v46_v8 = vld [vmem:[%s835_s2 + $0x28] sm:$0xff] }
   0x3   :  { %v503_v6 = vpack.c.bf16 %v44_v5, %v43_v2  ;;  %v506_v9 = vpack.c.bf16 %v46_v8, %v45_v7  ;;  %v47_v10 = vld [vmem:[%s835_s2 + $0x30] sm:$0xff]  ;;  %v40_v11 = vld [vmem:[%s833_s0 + $0x8] sm:$0xff]  ;;  %v48_v12 = vld [vmem:[%s835_s2 + $0x38] sm:$0xff] }
   0x4   :  { %501 = vmatpush1.bf16.msra.mxu0 %v500_v4  ;;  %468 = vmatprep.mubr.msk.f32.mxu0 %vm71_vm0, %v40_v11  ;;  %v150_v13 = vld [vmem:[%s837_s4] sm:$0xff]  ;;  %v151_v14 = vld [vmem:[%s837_s4 + $0x8] sm:$0xff] }
   0x5   :  { %502 = vmatprep.subr.bf16.mxu0 %v610_v3  ;;  %v533_v15 = vpack.c.bf16 %v151_v14, %v150_v13 }
   0x8   :  { %504 = vmatpush1.bf16.msra.mxu0 %v503_v6 }
   0x9   :  { %505 = vmatprep.subr.bf16.mxu0 %v610_v3 }
   0xa   :  { %18 = vsyncpa [#allocation5], 0  ;;  %v509_v16 = vpack.c.bf16 %v48_v12, %v47_v10  ;;  %534 = vmatpush3.bf16.msra.mxu1 %v533_v15  ;;  %v49_v17 = vld [vmem:[%s835_s2 + $0x40] sm:$0xff]  ;;  %v50_v18 = vld [vmem:[%s835_s2 + $0x48] sm:$0xff]  ;;  %v611_v38 = vmov 0.0   ;;  %vm75_vm1 = vcmask 1043456  }
   0xb   :  { %535 = vmatprep.subr.bf16.mxu1 %v610_v3  ;;  %v512_v19 = vpack.c.bf16 %v50_v18, %v49_v17  ;;  %v51_v20 = vld [vmem:[%s835_s2 + $0x50] sm:$0xff]  ;;  %v52_v21 = vld [vmem:[%s835_s2 + $0x58] sm:$0xff]  ;;  %v53_v23 = vld [vmem:[%s835_s2 + $0x60] sm:$0xff]  ;;  %vm612_vm2 = vmmov 0   ;;  %vm161_vm3 = vcmask 261120   ;;  %vm436_vm4 = vcmask 130048  }
   0xc   :  { %507 = vmatpush1.bf16.msra.mxu0 %v506_v9  ;;  %v515_v22 = vpack.c.bf16 %v52_v21, %v51_v20  ;;  %v54_v24 = vld [vmem:[%s835_s2 + $0x68] sm:$0xff]  ;;  %v55_v26 = vld [vmem:[%s835_s2 + $0x70] sm:$0xff]  ;;  %v56_v27 = vld [vmem:[%s835_s2 + $0x78] sm:$0xff]  ;;  %491 = vmatprep.mubr.msk.f32.mxu1 %vm612_vm2, %v611_v38  ;;  %vm253_vm5 = vcmask 64512   ;;  %s614_s18 = smov [#allocation4]  }
   0xd   :  { %508 = vmatprep.subr.bf16.mxu0 %v610_v3  ;;  %v518_v25 = vpack.c.bf16 %v54_v24, %v53_v23  ;;  %v521_v28 = vpack.c.bf16 %v56_v27, %v55_v26  ;;  %v57_v29 = vld [vmem:[%s835_s2 + $0x80] sm:$0xff]  ;;  %v58_v30 = vld [vmem:[%s835_s2 + $0x88] sm:$0xff]  ;;  %v59_v32 = vld [vmem:[%s835_s2 + $0x90] sm:$0xff] }
   0xe   :  { %v524_v31 = vpack.c.bf16 %v58_v30, %v57_v29  ;;  %v60_v33 = vld [vmem:[%s835_s2 + $0x98] sm:$0xff]  ;;  %v61_v35 = vld [vmem:[%s835_s2 + $0xa0] sm:$0xff]  ;;  %v62_v36 = vld [vmem:[%s835_s2 + $0xa8] sm:$0xff] }
   0xf   :  { %v527_v34 = vpack.c.bf16 %v60_v33, %v59_v32  ;;  %v530_v37 = vpack.c.bf16 %v62_v36, %v61_v35  ;;  %v63_v39 = vld [vmem:[%s835_s2 + $0xb0] sm:$0xf]  ;;  %v39_v40 = vld [vmem:[%s833_s0] sm:$0xff]  ;;  %v153_v42 = vld [vmem:[%s837_s4 + $0x18] sm:$0xff]  ;;  %s454_s0 = sshll.u32 %s614_s18, 4  ;;  %s455_s0 = int_to_ptr.vmem [resolvable:$true] %s454_s0 }
  0x10   :  { %510 = vmatpush1.bf16.msra.mxu0 %v509_v16  ;;  %v152_v41 = vld [vmem:[%s837_s4 + $0x10] sm:$0xff]  ;;  %v466_v44 = vld [vmem:[%s836_s3] ss:$0 sm:$0xff]  ;;  %v329_v56 = vld [vmem:[%s841_s8 + $0x8] sm:$0xff]  ;;  %s562_s19 = scalar_lea.vmem %s455_s0, 128  ;;  %p567_p1 = scmp.lt.s32.totalorder %s455_s0, %s455_s0 }
  0x11   :  { %511 = vmatprep.subr.bf16.mxu0 %v610_v3  ;;  %v536_v43 = vpack.c.bf16 %v153_v42, %v152_v41  ;;  %v469_v49 = vld [vmem:[%s838_s5] ss:$0 sm:$0xff]  ;;  %v331_v57 = vld [vmem:[%s841_s8 + $0x18] sm:$0xff]  ;;  %s613_s5 = smov 120   ;;  %v330_v62 = vld [vmem:[%s841_s8 + $0x10] sm:$0xff]  ;;  %p563_p0 = scmp.ne.s32.totalorder %s455_s0, %s562_s19 }
  0x12   :  { %v245_v55 = vld [vmem:[%s839_s6] sm:$0xff]  ;;  %v538_v58 = vpack.c.bf16 %v331_v57, %v329_v56  ;;  %v335_v4 = vld [vmem:[%s841_s8 + $0x38] sm:$0xff]  ;;  %v334_v7 = vld [vmem:[%s841_s8 + $0x30] sm:$0xff]  ;;  %p568_p2 = scmp.lt.s32.totalorder %s562_s19, %s562_s19 }
  0x13   :  { %537 = vmatpush3.bf16.msra.mxu1 %v536_v43  ;;  %v235_v60 = vld [vmem:[%s834_s1] sm:$0xff] }
  0x14   :  { %513 = vmatpush1.bf16.msra.mxu0 %v512_v19  ;;  %494 = vmatprep.subr.mxu1 %v611_v38  ;;  %v328_v61 = vld [vmem:[%s841_s8] sm:$0xff]  ;;  %p569_p3 = por %p568_p2, %p567_p1 }
  0x15   :  { %514 = vmatprep.subr.bf16.mxu0 %v610_v3  ;;  %v540_v1 = vpack.c.bf16 %v330_v62, %v328_v61  ;;  %v332_v6 = vld [vmem:[%s841_s8 + $0x20] sm:$0xff] }
  0x16   :  { %v544_v8 = vpack.c.bf16 %v334_v7, %v332_v6  ;;  %v471_v9 = vld [vmem:[%s840_s7] ss:$0 sm:$0xff]  ;;  %p570_p4 = pnand %p569_p3, %p563_p0 }
  0x18   :  { %516 = vmatpush1.bf16.msra.mxu0 %v515_v22 }
  0x19   :  { %517 = vmatprep.subr.bf16.mxu0 %v610_v3 }
  0x1c   :  { %519 = vmatpush1.bf16.msra.mxu0 %v518_v25 }
  0x1d   :  { %520 = vmatprep.subr.bf16.mxu0 %v610_v3 }
  0x20   :  { %522 = vmatpush1.bf16.msra.mxu0 %v521_v28 }
  0x21   :  { %523 = vmatprep.subr.bf16.mxu0 %v610_v3 }
  0x24   :  { %525 = vmatpush1.bf16.msra.mxu0 %v524_v31 }
  0x25   :  { %526 = vmatprep.subr.bf16.mxu0 %v610_v3 }
  0x28   :  { %528 = vmatpush1.bf16.msra.mxu0 %v527_v34 }
  0x29   :  { %529 = vmatprep.subr.bf16.mxu0 %v610_v3  ;;  %v333_v3 = vld [vmem:[%s841_s8 + $0x28] sm:$0xff] }
  0x2a   :  { %v542_v5 = vpack.c.bf16 %v335_v4, %v333_v3 }
  0x2c   :  { %531 = vmatpush1.bf16.msra.mxu0 %v530_v37 }
  0x2d   :  { %123 = vmatprep.subr.mxu0 %v611_v38 }
  0x30   :  { %467 = vmatpush1.msk.msra.mxu0 %vm75_vm1, %v63_v39 }
  0x31   :  { %144 = vmatmul.mubr.f32.vlgmr.msra.gmra.mrb[0].mxu0 %v39_v40 }
 0x104   :  { %v145_v45 = vpop.f32.mrb[0].mxu0 }
 0x105   :  { %v146_v46 = vadd.f32 %v466_v44, %v145_v45  ;;  %v147_v47 = vpop.f32.mrb[1].mxu0 }
 0x107   :  { %v149_v48 = vmax.f32 %v146_v46, 0.0 }
 0x109   :  { %492 = vmatmul.mubr.msk.f32.vlgmr.msra.gmra.mrb[0].mxu1 %vm161_vm3, %v149_v48 }
 0x10a   :  { %496 = vmatprep.mubr.msk.f32.mxu1 %vm612_vm2, %v611_v38  ;;  %495 = vmatpush3.msra.mxu1 %v245_v55 }
 0x10b   :  { %539 = vmatprep.subr.bf16.mxu1 %v538_v58 }
 0x1dc   :  { %v231_v50 = vpop.f32.mrb[0].mxu1 }
 0x1dd   :  { %v232_v51 = vadd.f32 %v469_v49, %v231_v50  ;;  %v493_v52 = vpop.f32.mrb[1].mxu1 }
 0x1df   :  { %v236_v53 = vmul.f32 0.5, %v232_v51  ;;  %437 = vst.msk [vmem:[#allocation4] sm:$0xff] %vm436_vm4, %v232_v51 }
 0x1e1   :  { %v237_v54 = vmul.f32 1.442695, %v236_v53 }
 0x1e3   :  { %552 = vpow2.f32 %v237_v54 }
 0x1ed   :  { %v553_v59 = vpop.eup %552 }
 0x1ee   :  { %240 = vrot.lane.b32.xlu0 %v553_v59, %s613_s5 }
 0x260   :  { %v241_v63 = vpop.permute.xlu0 %240 }
 0x261   :  { %v243_v0 = vmul.f32 %v241_v63, %v235_v60 }
 0x263   :  { %v244_v2 = vadd.f32 %v243_v0, %v232_v51 }
 0x265   :  { %497 = vmatmul.mubr.msk.f32.vlgmr.msra.gmra.mrb[2].mxu1 %vm253_vm5, %v244_v2 }
 0x266   :  { %541 = vmatpush1.bf16.msra.mxu1 %v540_v1  ;;  %415 = vmatprep.mubr.f32.mxu1 %v611_v38 }
 0x267   :  { %543 = vmatprep.subr.bf16.mxu1 %v542_v5 }
 0x26a   :  { %545 = vmatpush1.bf16.msra.mxu1 %v544_v8 }
 0x338   :  { %v323_v10 = vpop.f32.mrb[2].mxu1 }
 0x339   :  { %v324_v11 = vadd.f32 %v471_v9, %v323_v10  ;;  %v498_v12 = vpop.f32.mrb[3].mxu1 }
 0x33b   :  { %v327_v13 = vmax.f32 %v324_v11, 0.0 }
 0x33d   :  { %473 = vmatmul.mubr.msk.f32.vlgmr.msra.gmra.mrb[4].mxu1 %vm161_vm3, %v327_v13 }
 0x33e   :  { %573 = shalt.err (!%p570_p4)
}
 0x33f   :  { %s574_s7 = scalar_lea.hbm %s844_s11, 128 }
 0x340   :  { %p575_p5 = scmp.ne.s32.totalorder %s844_s11, %s574_s7  ;;  %p578_p6 = scmp.lt.u32.totalorder %s574_s7, %s844_s11 }
 0x342   :  { %p580_p7 = pnand %p578_p6, %p575_p5 }
 0x344   :  { %583 = shalt.err (!%p580_p7)
}
 0x345   :  { %457 = dma.vmem_to_hbm [thread:$0]  %s455_s0, 128, %s844_s11, [#allocation5]   ;;  %v338_v14 = vlaneseq  ;;  %v336_v17 = vld [vmem:[%s842_s9] sm:$0x3] }
 0x346   :  { %s615_s11 = smov [#allocation2]  }
 0x347   :  { %v339_v15 = vshrl.u32 %v338_v14, 7  ;;  %s444_s26 = sshll.u32 %s615_s11, 4  ;;  %s445_s26 = int_to_ptr.vmem [resolvable:$true] %s444_s26 }
 0x348   :  { %s584_s9 = scalar_lea.vmem %s445_s26, 256  ;;  %p589_p9 = scmp.lt.s32.totalorder %s445_s26, %s445_s26 }
 0x349   :  { %v340_v16 = vsub.s32 0, %v339_v15  ;;  %v344_v18 = vsub.s32 1, %v339_v15  ;;  %p585_p8 = scmp.ne.s32.totalorder %s445_s26, %s584_s9  ;;  %p590_p10 = scmp.lt.s32.totalorder %s584_s9, %s584_s9 }
 0x34b   :  { %v341_v19 = vrot.slane %v336_v17, %v340_v16  ;;  %v345_v20 = vrot.slane %v336_v17, %v344_v18  ;;  %p591_p11 = por %p590_p10, %p589_p9 }
 0x34d   :  { %p592_p12 = pnand %p591_p11, %p585_p8 }
 0x410   :  { %v417_v21 = vpop.f32.mrb[4].mxu1 }
 0x411   :  { %v418_v22 = vadd.f32 %v417_v21, %v341_v19  ;;  %v419_v23 = vpop.f32.mrb[5].mxu1 }
 0x412   :  { %v420_v24 = vadd.f32 %v419_v23, %v345_v20 }
 0x413   :  { %v474_v25 = vmul.f32 -1.442695, %v418_v22 }
 0x414   :  { %v475_v26 = vmul.f32 -1.442695, %v420_v24 }
 0x415   :  { %554 = vpow2.f32 %v474_v25 }
 0x416   :  { %556 = vpow2.f32 %v475_v26 }
 0x41f   :  { %v555_v27 = vpop.eup %554 }
 0x420   :  { %v557_v28 = vpop.eup %556  ;;  %v428_v29 = vadd.f32 1.0, %v555_v27 }
 0x421   :  { %v429_v30 = vadd.f32 1.0, %v557_v28 }
 0x422   :  { %558 = vrcp.f32 %v428_v29 }
 0x423   :  { %560 = vrcp.f32 %v429_v30 }
 0x42c   :  { %v559_v31 = vpop.eup %558 }
 0x42d   :  { %v561_v32 = vpop.eup %560  ;;  %434 = vst [vmem:[#allocation2] sm:$0xff] %v559_v31 }
 0x42e   :  { %435 = vst.msk [vmem:[#allocation2 + $0x8] sm:$0xff] %vm71_vm0, %v561_v32 }
 0x42f   :  { %595 = shalt.err (!%p592_p12)
}
 0x430   :  { %s596_s28 = scalar_lea.hbm %s843_s10, 256 }
 0x431   :  { %p597_p13 = scmp.ne.s32.totalorder %s843_s10, %s596_s28  ;;  %p600_p0 = scmp.lt.u32.totalorder %s596_s28, %s843_s10 }
 0x433   :  { %p602_p1 = pnand %p600_p0, %p597_p13 }
 0x435   :  { %605 = shalt.err (!%p602_p1)
}
 0x436   :  { %447 = dma.vmem_to_hbm [thread:$0]  %s445_s26, 256, %s843_s10, [#allocation3]  }
 0x437   :  { %606 = dma.done.wait [#allocation3], 256  }
 0x438   :  { %607 = vsyncadd [#allocation3], 4294967040 }
 0x439   :  { %608 = dma.done.wait [#allocation5], 128  }
 0x43a   :  { %609 = vsyncadd [#allocation5], 4294967168 }
 0x43b   :  { %464 = vsyncpa [#allocation3], 1 }
 0x43c   :  { %465 = vsyncpa [#allocation5], 1 }

</bundles_post_ra>
